<compile_context>
chip_gen: v5e
topology: v5e:2x2
jax: 0.10.0
libtpu: 0.0.40
codegen_flags: <defaults>
</compile_context>

<pallas_src>
import functools

import jax
import jax.numpy as jnp
import numpy as np
from jax.experimental import pallas as pl
from jax.experimental.pallas import tpu as pltpu


# -----------------------------------------------------------------------------
# In-kernel forward body (operates on VMEM-resident values / refs)
# -----------------------------------------------------------------------------
def _layer_stack(h, a, w_ref, b_ref, gamma_ref, beta_ref, wgn_ref, bg_ref,
                 res_w, valid, *, hidden_dim):
    """One full NeuralODEFunc RHS evaluation.

    h:         [N, Dp] value, node states (padded lanes exactly 0)
    a:         [N, N]  value, normalized adjacency D^{-1/2} A D^{-1/2}
    w_ref:     [3, Dp, 2*Dp]  W_aug[i] = [W_i | wg_h]  (zero-padded)
    b_ref:     [3, 1, Dp]     GCN biases
    gamma_ref: [3, 1, Dp]     LayerNorm scales (padded lanes 0)
    beta_ref:  [3, 1, Dp]     LayerNorm shifts (padded lanes 0)
    wgn_ref:   [Dp, Dp]       gate weight acting on h_new
    bg_ref:    [1, Dp]        gate bias
    res_w:     scalar         residual weight
    valid:     [1, Dp] f32    1.0 on real hidden lanes, 0.0 on pad lanes
    """
    d_pad = h.shape[-1]
    inv_d = 1.0 / float(hidden_dim)
    eps = 1e-5
    h_orig = h

    for i in range(3):
        # h @ [W_i | wg_h]  -> one 256-lane-wide MXU push: columns [:Dp] feed
        # the GCN aggregation, columns [Dp:] are the gate's h-half.
        hw_full = jnp.dot(h, w_ref[i], preferred_element_type=jnp.float32)

        # GCNConv: A_hat @ (h @ W_i) + b_i
        agg = jnp.dot(a, hw_full[:, :d_pad],
                      preferred_element_type=jnp.float32) + b_ref[i]

        # LayerNorm over the real hidden_dim lanes.  agg's padded lanes are
        # exactly 0 so the plain sum / hidden_dim is the correct mean.  The
        # centered term is lane-masked before squaring so padded lanes do not
        # pollute the (two-pass, cancellation-safe) variance.
        mean = jnp.sum(agg, axis=-1, keepdims=True) * inv_d
        centered = agg - mean
        var = jnp.sum((centered * valid) ** 2, axis=-1, keepdims=True) * inv_d
        # gamma/beta are 0 in padded lanes -> h_new padded lanes return to 0.
        h_new = centered * jax.lax.rsqrt(var + eps) * gamma_ref[i] + beta_ref[i]

        if i > 0:
            # gate = sigmoid(h @ wg_h + h_new @ wg_n + bg); h-half already in hw_full.
            g = jax.nn.sigmoid(
                hw_full[:, d_pad:]
                + jnp.dot(h_new, wgn_ref[...], preferred_element_type=jnp.float32)
                + bg_ref[...])
            # h + g*(h_new - h): padded lanes 0 + 0.5*(0-0) = 0.
            h = h + g * (h_new - h)
        else:
            h = h_new

    h = jnp.tanh(h)
    return h + res_w * h_orig


# -----------------------------------------------------------------------------
# Kernels
# -----------------------------------------------------------------------------
def ode_func_kernel(a_ref, h_ref, w_ref, b_ref, gamma_ref, beta_ref,
                    wgn_ref, bg_ref, resw_ref, out_ref, *, hidden_dim):
    """Single RHS evaluation: out = dh/dt(h)."""
    d_pad = h_ref.shape[-1]
    lane = jax.lax.broadcasted_iota(jnp.int32, (1, d_pad), 1)
    valid = (lane < hidden_dim).astype(jnp.float32)
    out_ref[...] = _layer_stack(
        h_ref[...], a_ref[...], w_ref, b_ref, gamma_ref, beta_ref,
        wgn_ref, bg_ref, resw_ref[0], valid, hidden_dim=hidden_dim)


def rk4_step_kernel(a_ref, h_ref, w_ref, b_ref, gamma_ref, beta_ref,
                    wgn_ref, bg_ref, resw_ref, dt_ref, out_ref, *, hidden_dim):
    """One fused RK4 integrator step: all 4 RHS stages evaluated inside one
    pallas_call, so A_hat and all weights are DMA'd into VMEM once per step."""
    d_pad = h_ref.shape[-1]
    lane = jax.lax.broadcasted_iota(jnp.int32, (1, d_pad), 1)
    valid = (lane < hidden_dim).astype(jnp.float32)

    a = a_ref[...]
    h0 = h_ref[...]
    dt = dt_ref[0]
    res_w = resw_ref[0]

    def rhs(h):
        return _layer_stack(h, a, w_ref, b_ref, gamma_ref, beta_ref,
                            wgn_ref, bg_ref, res_w, valid, hidden_dim=hidden_dim)

    k1 = rhs(h0)
    k2 = rhs(h0 + (0.5 * dt) * k1)
    k3 = rhs(h0 + (0.5 * dt) * k2)
    k4 = rhs(h0 + dt * k3)
    out_ref[...] = h0 + (dt / 6.0) * (k1 + 2.0 * k2 + 2.0 * k3 + k4)


# -----------------------------------------------------------------------------
# Host-side preparation (hoisted out of the per-eval path)
# -----------------------------------------------------------------------------
def build_gcn_adjacency(edge_index, num_nodes):
    """Dense D^{-1/2} A D^{-1/2} with PyG GCNConv semantics (add_self_loops=False)."""
    src = edge_index[0]
    dst = edge_index[1]
    adj = jnp.zeros((num_nodes, num_nodes), jnp.float32).at[dst, src].add(1.0)
    deg = jnp.sum(adj, axis=1)
    dinv = jnp.where(deg > 0, deg ** -0.5, 0.0)
    return adj * dinv[:, None] * dinv[None, :]


def prepare_neural_ode_func(params, edge_index, num_nodes, hidden_dim):
    """One-time (per ODE solve) preparation:
      - build the dense normalized adjacency once,
      - zero-pad every parameter to a lane-dense hidden dim Dp (multiple of 128),
      - fold the gate's h-half weight into the GCN weight: W_aug = [W_i | wg_h].
    """
    d = hidden_dim
    d_pad = max(128, ((d + 127) // 128) * 128)
    pd = d_pad - d

    a_hat = build_gcn_adjacency(edge_index, num_nodes)

    w = jnp.pad(params["W"], ((0, 0), (0, pd), (0, pd)))            # [3, Dp, Dp]
    wg_h = jnp.pad(params["wg_h"], ((0, pd), (0, pd)))              # [Dp, Dp]
    w_aug = jnp.concatenate(
        [w, jnp.broadcast_to(wg_h[None], (3, d_pad, d_pad))], axis=2)  # [3, Dp, 2Dp]

    b = jnp.pad(params["b"], ((0, 0), (0, 0), (0, pd)))
    gamma = jnp.pad(params["gamma"], ((0, 0), (0, 0), (0, pd)))
    beta = jnp.pad(params["beta"], ((0, 0), (0, 0), (0, pd)))
    wg_n = jnp.pad(params["wg_n"], ((0, pd), (0, pd)))
    bg = jnp.pad(params["bg"], ((0, 0), (0, pd)))

    return {
        "a_hat": a_hat, "W_aug": w_aug, "b": b, "gamma": gamma, "beta": beta,
        "wg_n": wg_n, "bg": bg, "res_w": params["res_w"],
        "hidden_dim": d, "d_pad": d_pad,
    }


def pad_state(h, d_pad):
    """Pad node states to the lane-dense width ONCE at the solve boundary."""
    return jnp.pad(h, ((0, 0), (0, d_pad - h.shape[-1])))


# -----------------------------------------------------------------------------
# pallas_call wrappers (operate on padded state; pad/slice happens outside)
# -----------------------------------------------------------------------------
def _vmem():
    return pl.BlockSpec(memory_space=pltpu.MemorySpace.VMEM)


def _smem():
    return pl.BlockSpec(memory_space=pltpu.MemorySpace.SMEM)


@functools.partial(jax.jit, static_argnames=("hidden_dim",))
def _rhs_padded(a_hat, h_pad, w_aug, b, gamma, beta, wg_n, bg, res_w, *, hidden_dim):
    n, d_pad = h_pad.shape
    kernel = functools.partial(ode_func_kernel, hidden_dim=hidden_dim)
    return pl.pallas_call(
        kernel,
        out_shape=jax.ShapeDtypeStruct((n, d_pad), jnp.float32),
        in_specs=[_vmem()] * 8 + [_smem()],
        out_specs=_vmem(),
    )(a_hat, h_pad, w_aug, b, gamma, beta, wg_n, bg, res_w)


@functools.partial(jax.jit, static_argnames=("hidden_dim",))
def _rk4_padded(a_hat, h_pad, w_aug, b, gamma, beta, wg_n, bg, res_w, dt, *, hidden_dim):
    n, d_pad = h_pad.shape
    kernel = functools.partial(rk4_step_kernel, hidden_dim=hidden_dim)
    return pl.pallas_call(
        kernel,
        out_shape=jax.ShapeDtypeStruct((n, d_pad), jnp.float32),
        in_specs=[_vmem()] * 8 + [_smem(), _smem()],
        out_specs=_vmem(),
    )(a_hat, h_pad, w_aug, b, gamma, beta, wg_n, bg, res_w, dt)


def neural_ode_func(t, h_pad, prepped):
    """RHS wrapper matching NeuralODEFunc.forward(t, h); padded in / padded out."""
    del t
    return _rhs_padded(prepped["a_hat"], h_pad, prepped["W_aug"], prepped["b"],
                       prepped["gamma"], prepped["beta"], prepped["wg_n"],
                       prepped["bg"], prepped["res_w"],
                       hidden_dim=prepped["hidden_dim"])


def rk4_step(h_pad, dt_arr, prepped):
    """One fused RK4 step (4 RHS evals in one pallas_call); padded in / padded out."""
    return _rk4_padded(prepped["a_hat"], h_pad, prepped["W_aug"], prepped["b"],
                       prepped["gamma"], prepped["beta"], prepped["wg_n"],
                       prepped["bg"], prepped["res_w"], dt_arr,
                       hidden_dim=prepped["hidden_dim"])


# -----------------------------------------------------------------------------
# Pure-JAX reference (matches the torch module semantics)
# -----------------------------------------------------------------------------
def reference_forward(h, params, edge_index):
    n, d = h.shape
    a_hat = build_gcn_adjacency(edge_index, n)
    h_orig = h
    for i in range(3):
        agg = a_hat @ (h @ params["W"][i]) + params["b"][i]
        mean = jnp.mean(agg, axis=-1, keepdims=True)
        var = jnp.mean((agg - mean) ** 2, axis=-1, keepdims=True)
        h_new = (agg - mean) / jnp.sqrt(var + 1e-5)
        h_new = h_new * params["gamma"][i] + params["beta"][i]
        if i > 0:
            g = jax.nn.sigmoid(h @ params["wg_h"] + h_new @ params["wg_n"] + params["bg"])
            h = g * h_new + (1 - g) * h
        else:
            h = h_new
    h = jnp.tanh(h)
    return h + params["res_w"][0] * h_orig


def reference_rk4_step(h, dt, params, edge_index):
    f = lambda x: reference_forward(x, params, edge_index)
    k1 = f(h)
    k2 = f(h + 0.5 * dt * k1)
    k3 = f(h + 0.5 * dt * k2)
    k4 = f(h + dt * k3)
    return h + (dt / 6.0) * (k1 + 2.0 * k2 + 2.0 * k3 + k4)


# -----------------------------------------------------------------------------
if __name__ == "__main__":
    N = 8          # number of graph nodes
    D = 32         # hidden_dim
    E = 16         # number of edges

    key = jax.random.PRNGKey(0)
    keys = jax.random.split(key, 10)

    # deterministic synthetic parameters (shapes follow the torch module)
    params = {
        "W": 0.2 * jax.random.normal(keys[0], (3, D, D), jnp.float32),
        "b": 0.1 * jax.random.normal(keys[1], (3, 1, D), jnp.float32),
        "gamma": 1.0 + 0.05 * jax.random.normal(keys[2], (3, 1, D), jnp.float32),
        "beta": 0.05 * jax.random.normal(keys[3], (3, 1, D), jnp.float32),
        "wg_h": 0.2 * jax.random.normal(keys[4], (D, D), jnp.float32),
        "wg_n": 0.2 * jax.random.normal(keys[5], (D, D), jnp.float32),
        "bg": 0.1 * jax.random.normal(keys[6], (1, D), jnp.float32),
        "res_w": jnp.array([0.1], jnp.float32),
    }

    edge_index = jax.random.randint(keys[7], (2, E), 0, N, dtype=jnp.int32)
    h = jax.random.normal(keys[8], (N, D), jnp.float32)
    t = jnp.zeros((), jnp.float32)   # unused, as in the torch forward

    # one-time preparation (A_hat + padded / fused params), hoisted out of evals
    prepped = prepare_neural_ode_func(params, edge_index, N, D)
    d_pad = prepped["d_pad"]

    # pad node states ONCE at the solve boundary; they stay padded from here on
    h_pad = pad_state(h, d_pad)

    # --- single RHS evaluation --------------------------------------------
    dh_pad = jax.block_until_ready(neural_ode_func(t, h_pad, prepped))
    dh_ref = reference_forward(h, params, edge_index)
    np.testing.assert_allclose(np.asarray(dh_pad[:, :D]), np.asarray(dh_ref),
                               atol=1e-4, rtol=1e-4)
    # padded-lane invariant (load-bearing for the padded-state design)
    np.testing.assert_array_equal(np.asarray(dh_pad[:, D:]), 0.0)

    # --- a few fused RK4 integrator steps ----------------------------------
    dt = 0.05
    dt_arr = jnp.array([dt], jnp.float32)
    h_ref_state = h
    for _ in range(3):
        h_pad = rk4_step(h_pad, dt_arr, prepped)
        h_ref_state = reference_rk4_step(h_ref_state, dt, params, edge_index)
    h_pad = jax.block_until_ready(h_pad)
    np.testing.assert_allclose(np.asarray(h_pad[:, :D]), np.asarray(h_ref_state),
                               atol=1e-4, rtol=1e-3)
    np.testing.assert_array_equal(np.asarray(h_pad[:, D:]), 0.0)

    print("KERNEL_OK")
</pallas_src>

<mosaic_0001>
module attributes {stable_mosaic.version = 11 : i64} {
  func.func @ode_func_kernel(%arg0: memref<8x8xf32, #tpu.memory_space<vmem>>, %arg1: memref<8x128xf32, #tpu.memory_space<vmem>>, %arg2: memref<3x128x256xf32, #tpu.memory_space<vmem>>, %arg3: memref<3x1x128xf32, #tpu.memory_space<vmem>>, %arg4: memref<3x1x128xf32, #tpu.memory_space<vmem>>, %arg5: memref<3x1x128xf32, #tpu.memory_space<vmem>>, %arg6: memref<128x128xf32, #tpu.memory_space<vmem>>, %arg7: memref<1x128xf32, #tpu.memory_space<vmem>>, %arg8: memref<1xf32, #tpu.memory_space<smem>>, %arg9: memref<8x128xf32, #tpu.memory_space<vmem>>) attributes {dimension_semantics = [], scalar_prefetch = 0 : i64, scratch_operands = 0 : i64, tpu.core_type = #tpu.core_type<tc>} {
    %0 = tpu.iota {dimensions = array<i32: 1>} : vector<1x128xi32>
    %c32_i32 = arith.constant 32 : i32
    %1 = vector.broadcast %c32_i32 : i32 to vector<1x128xi32>
    %2 = arith.cmpi slt, %0, %1 : vector<1x128xi32>
    %3 = arith.extui %2 : vector<1x128xi1> to vector<1x128xi32>
    %4 = arith.sitofp %3 : vector<1x128xi32> to vector<1x128xf32>
    %c0 = arith.constant 0 : index
    %c0_0 = arith.constant 0 : index
    %5 = vector.load %arg1[%c0, %c0_0] : memref<8x128xf32, #tpu.memory_space<vmem>>, vector<8x128xf32>
    %c0_1 = arith.constant 0 : index
    %c0_2 = arith.constant 0 : index
    %6 = vector.load %arg0[%c0_1, %c0_2] : memref<8x8xf32, #tpu.memory_space<vmem>>, vector<8x8xf32>
    %c0_3 = arith.constant 0 : index
    %7 = memref.load %arg8[%c0_3] : memref<1xf32, #tpu.memory_space<smem>>
    %c0_4 = arith.constant 0 : index
    %c0_5 = arith.constant 0 : index
    %c0_6 = arith.constant 0 : index
    %8 = vector.load %arg2[%c0_4, %c0_5, %c0_6] : memref<3x128x256xf32, #tpu.memory_space<vmem>>, vector<1x128x256xf32>
    %9 = vector.shape_cast %8 : vector<1x128x256xf32> to vector<128x256xf32>
    %cst = arith.constant dense<0.000000e+00> : vector<8x256xf32>
    %10 = tpu.matmul %5, %9, %cst {dimension_numbers = #tpu.dot_dimension_numbers<[1], [0], [0], [1], [0, 0, 1, 1], [], []>} : vector<8x128xf32>, vector<128x256xf32>, vector<8x256xf32> -> vector<8x256xf32>
    %11 = vector.extract_strided_slice %10 {offsets = [0, 0], sizes = [8, 128], strides = [1, 1]} : vector<8x256xf32> to vector<8x128xf32>
    %cst_7 = arith.constant dense<0.000000e+00> : vector<8x128xf32>
    %12 = tpu.matmul %6, %11, %cst_7 {dimension_numbers = #tpu.dot_dimension_numbers<[1], [0], [0], [1], [0, 0, 1, 1], [], []>} : vector<8x8xf32>, vector<8x128xf32>, vector<8x128xf32> -> vector<8x128xf32>
    %c0_8 = arith.constant 0 : index
    %c0_9 = arith.constant 0 : index
    %c0_10 = arith.constant 0 : index
    %13 = vector.load %arg3[%c0_8, %c0_9, %c0_10] : memref<3x1x128xf32, #tpu.memory_space<vmem>>, vector<1x1x128xf32>
    %14 = vector.shape_cast %13 : vector<1x1x128xf32> to vector<1x128xf32>
    %15 = vector.broadcast %14 : vector<1x128xf32> to vector<8x128xf32>
    %16 = arith.addf %12, %15 : vector<8x128xf32>
    %cst_11 = arith.constant dense<0.000000e+00> : vector<8xf32>
    %17 = vector.multi_reduction <add>, %16, %cst_11 [1] : vector<8x128xf32> to vector<8xf32>
    %18 = vector.shape_cast %17 : vector<8xf32> to vector<8x1xf32>
    %cst_12 = arith.constant 3.125000e-02 : f32
    %19 = vector.broadcast %cst_12 : f32 to vector<8x1xf32>
    %20 = arith.mulf %18, %19 : vector<8x1xf32>
    %21 = vector.broadcast %20 : vector<8x1xf32> to vector<8x128xf32>
    %22 = arith.subf %16, %21 : vector<8x128xf32>
    %23 = vector.broadcast %4 : vector<1x128xf32> to vector<8x128xf32>
    %24 = arith.mulf %22, %23 : vector<8x128xf32>
    %25 = arith.mulf %24, %24 : vector<8x128xf32>
    %cst_13 = arith.constant dense<0.000000e+00> : vector<8xf32>
    %26 = vector.multi_reduction <add>, %25, %cst_13 [1] : vector<8x128xf32> to vector<8xf32>
    %27 = vector.shape_cast %26 : vector<8xf32> to vector<8x1xf32>
    %cst_14 = arith.constant 3.125000e-02 : f32
    %28 = vector.broadcast %cst_14 : f32 to vector<8x1xf32>
    %29 = arith.mulf %27, %28 : vector<8x1xf32>
    %cst_15 = arith.constant 9.99999974E-6 : f32
    %30 = vector.broadcast %cst_15 : f32 to vector<8x1xf32>
    %31 = arith.addf %29, %30 : vector<8x1xf32>
    %32 = math.rsqrt %31 : vector<8x1xf32>
    %33 = vector.broadcast %32 : vector<8x1xf32> to vector<8x128xf32>
    %34 = arith.mulf %22, %33 : vector<8x128xf32>
    %c0_16 = arith.constant 0 : index
    %c0_17 = arith.constant 0 : index
    %c0_18 = arith.constant 0 : index
    %35 = vector.load %arg4[%c0_16, %c0_17, %c0_18] : memref<3x1x128xf32, #tpu.memory_space<vmem>>, vector<1x1x128xf32>
    %36 = vector.shape_cast %35 : vector<1x1x128xf32> to vector<1x128xf32>
    %37 = vector.broadcast %36 : vector<1x128xf32> to vector<8x128xf32>
    %38 = arith.mulf %34, %37 : vector<8x128xf32>
    %c0_19 = arith.constant 0 : index
    %c0_20 = arith.constant 0 : index
    %c0_21 = arith.constant 0 : index
    %39 = vector.load %arg5[%c0_19, %c0_20, %c0_21] : memref<3x1x128xf32, #tpu.memory_space<vmem>>, vector<1x1x128xf32>
    %40 = vector.shape_cast %39 : vector<1x1x128xf32> to vector<1x128xf32>
    %41 = vector.broadcast %40 : vector<1x128xf32> to vector<8x128xf32>
    %42 = arith.addf %38, %41 : vector<8x128xf32>
    %c1 = arith.constant 1 : index
    %c0_22 = arith.constant 0 : index
    %c0_23 = arith.constant 0 : index
    %43 = vector.load %arg2[%c1, %c0_22, %c0_23] : memref<3x128x256xf32, #tpu.memory_space<vmem>>, vector<1x128x256xf32>
    %44 = vector.shape_cast %43 : vector<1x128x256xf32> to vector<128x256xf32>
    %cst_24 = arith.constant dense<0.000000e+00> : vector<8x256xf32>
    %45 = tpu.matmul %42, %44, %cst_24 {dimension_numbers = #tpu.dot_dimension_numbers<[1], [0], [0], [1], [0, 0, 1, 1], [], []>} : vector<8x128xf32>, vector<128x256xf32>, vector<8x256xf32> -> vector<8x256xf32>
    %46 = vector.extract_strided_slice %45 {offsets = [0, 0], sizes = [8, 128], strides = [1, 1]} : vector<8x256xf32> to vector<8x128xf32>
    %cst_25 = arith.constant dense<0.000000e+00> : vector<8x128xf32>
    %47 = tpu.matmul %6, %46, %cst_25 {dimension_numbers = #tpu.dot_dimension_numbers<[1], [0], [0], [1], [0, 0, 1, 1], [], []>} : vector<8x8xf32>, vector<8x128xf32>, vector<8x128xf32> -> vector<8x128xf32>
    %c1_26 = arith.constant 1 : index
    %c0_27 = arith.constant 0 : index
    %c0_28 = arith.constant 0 : index
    %48 = vector.load %arg3[%c1_26, %c0_27, %c0_28] : memref<3x1x128xf32, #tpu.memory_space<vmem>>, vector<1x1x128xf32>
    %49 = vector.shape_cast %48 : vector<1x1x128xf32> to vector<1x128xf32>
    %50 = vector.broadcast %49 : vector<1x128xf32> to vector<8x128xf32>
    %51 = arith.addf %47, %50 : vector<8x128xf32>
    %cst_29 = arith.constant dense<0.000000e+00> : vector<8xf32>
    %52 = vector.multi_reduction <add>, %51, %cst_29 [1] : vector<8x128xf32> to vector<8xf32>
    %53 = vector.shape_cast %52 : vector<8xf32> to vector<8x1xf32>
    %cst_30 = arith.constant 3.125000e-02 : f32
    %54 = vector.broadcast %cst_30 : f32 to vector<8x1xf32>
    %55 = arith.mulf %53, %54 : vector<8x1xf32>
    %56 = vector.broadcast %55 : vector<8x1xf32> to vector<8x128xf32>
    %57 = arith.subf %51, %56 : vector<8x128xf32>
    %58 = vector.broadcast %4 : vector<1x128xf32> to vector<8x128xf32>
    %59 = arith.mulf %57, %58 : vector<8x128xf32>
    %60 = arith.mulf %59, %59 : vector<8x128xf32>
    %cst_31 = arith.constant dense<0.000000e+00> : vector<8xf32>
    %61 = vector.multi_reduction <add>, %60, %cst_31 [1] : vector<8x128xf32> to vector<8xf32>
    %62 = vector.shape_cast %61 : vector<8xf32> to vector<8x1xf32>
    %cst_32 = arith.constant 3.125000e-02 : f32
    %63 = vector.broadcast %cst_32 : f32 to vector<8x1xf32>
    %64 = arith.mulf %62, %63 : vector<8x1xf32>
    %cst_33 = arith.constant 9.99999974E-6 : f32
    %65 = vector.broadcast %cst_33 : f32 to vector<8x1xf32>
    %66 = arith.addf %64, %65 : vector<8x1xf32>
    %67 = math.rsqrt %66 : vector<8x1xf32>
    %68 = vector.broadcast %67 : vector<8x1xf32> to vector<8x128xf32>
    %69 = arith.mulf %57, %68 : vector<8x128xf32>
    %c1_34 = arith.constant 1 : index
    %c0_35 = arith.constant 0 : index
    %c0_36 = arith.constant 0 : index
    %70 = vector.load %arg4[%c1_34, %c0_35, %c0_36] : memref<3x1x128xf32, #tpu.memory_space<vmem>>, vector<1x1x128xf32>
    %71 = vector.shape_cast %70 : vector<1x1x128xf32> to vector<1x128xf32>
    %72 = vector.broadcast %71 : vector<1x128xf32> to vector<8x128xf32>
    %73 = arith.mulf %69, %72 : vector<8x128xf32>
    %c1_37 = arith.constant 1 : index
    %c0_38 = arith.constant 0 : index
    %c0_39 = arith.constant 0 : index
    %74 = vector.load %arg5[%c1_37, %c0_38, %c0_39] : memref<3x1x128xf32, #tpu.memory_space<vmem>>, vector<1x1x128xf32>
    %75 = vector.shape_cast %74 : vector<1x1x128xf32> to vector<1x128xf32>
    %76 = vector.broadcast %75 : vector<1x128xf32> to vector<8x128xf32>
    %77 = arith.addf %73, %76 : vector<8x128xf32>
    %78 = vector.extract_strided_slice %45 {offsets = [0, 128], sizes = [8, 128], strides = [1, 1]} : vector<8x256xf32> to vector<8x128xf32>
    %c0_40 = arith.constant 0 : index
    %c0_41 = arith.constant 0 : index
    %79 = vector.load %arg6[%c0_40, %c0_41] : memref<128x128xf32, #tpu.memory_space<vmem>>, vector<128x128xf32>
    %cst_42 = arith.constant dense<0.000000e+00> : vector<8x128xf32>
    %80 = tpu.matmul %77, %79, %cst_42 {dimension_numbers = #tpu.dot_dimension_numbers<[1], [0], [0], [1], [0, 0, 1, 1], [], []>} : vector<8x128xf32>, vector<128x128xf32>, vector<8x128xf32> -> vector<8x128xf32>
    %81 = arith.addf %78, %80 : vector<8x128xf32>
    %c0_43 = arith.constant 0 : index
    %c0_44 = arith.constant 0 : index
    %82 = vector.load %arg7[%c0_43, %c0_44] : memref<1x128xf32, #tpu.memory_space<vmem>>, vector<1x128xf32>
    %83 = vector.broadcast %82 : vector<1x128xf32> to vector<8x128xf32>
    %84 = arith.addf %81, %83 : vector<8x128xf32>
    %85 = arith.negf %84 : vector<8x128xf32>
    %86 = math.exp %85 : vector<8x128xf32>
    %cst_45 = arith.constant 1.000000e+00 : f32
    %87 = vector.broadcast %cst_45 : f32 to vector<8x128xf32>
    %88 = arith.addf %87, %86 : vector<8x128xf32>
    %89 = arith.divf %87, %88 : vector<8x128xf32>
    %90 = arith.subf %77, %42 : vector<8x128xf32>
    %91 = arith.mulf %89, %90 : vector<8x128xf32>
    %92 = arith.addf %42, %91 : vector<8x128xf32>
    %c2 = arith.constant 2 : index
    %c0_46 = arith.constant 0 : index
    %c0_47 = arith.constant 0 : index
    %93 = vector.load %arg2[%c2, %c0_46, %c0_47] : memref<3x128x256xf32, #tpu.memory_space<vmem>>, vector<1x128x256xf32>
    %94 = vector.shape_cast %93 : vector<1x128x256xf32> to vector<128x256xf32>
    %cst_48 = arith.constant dense<0.000000e+00> : vector<8x256xf32>
    %95 = tpu.matmul %92, %94, %cst_48 {dimension_numbers = #tpu.dot_dimension_numbers<[1], [0], [0], [1], [0, 0, 1, 1], [], []>} : vector<8x128xf32>, vector<128x256xf32>, vector<8x256xf32> -> vector<8x256xf32>
    %96 = vector.extract_strided_slice %95 {offsets = [0, 0], sizes = [8, 128], strides = [1, 1]} : vector<8x256xf32> to vector<8x128xf32>
    %cst_49 = arith.constant dense<0.000000e+00> : vector<8x128xf32>
    %97 = tpu.matmul %6, %96, %cst_49 {dimension_numbers = #tpu.dot_dimension_numbers<[1], [0], [0], [1], [0, 0, 1, 1], [], []>} : vector<8x8xf32>, vector<8x128xf32>, vector<8x128xf32> -> vector<8x128xf32>
    %c2_50 = arith.constant 2 : index
    %c0_51 = arith.constant 0 : index
    %c0_52 = arith.constant 0 : index
    %98 = vector.load %arg3[%c2_50, %c0_51, %c0_52] : memref<3x1x128xf32, #tpu.memory_space<vmem>>, vector<1x1x128xf32>
    %99 = vector.shape_cast %98 : vector<1x1x128xf32> to vector<1x128xf32>
    %100 = vector.broadcast %99 : vector<1x128xf32> to vector<8x128xf32>
    %101 = arith.addf %97, %100 : vector<8x128xf32>
    %cst_53 = arith.constant dense<0.000000e+00> : vector<8xf32>
    %102 = vector.multi_reduction <add>, %101, %cst_53 [1] : vector<8x128xf32> to vector<8xf32>
    %103 = vector.shape_cast %102 : vector<8xf32> to vector<8x1xf32>
    %cst_54 = arith.constant 3.125000e-02 : f32
    %104 = vector.broadcast %cst_54 : f32 to vector<8x1xf32>
    %105 = arith.mulf %103, %104 : vector<8x1xf32>
    %106 = vector.broadcast %105 : vector<8x1xf32> to vector<8x128xf32>
    %107 = arith.subf %101, %106 : vector<8x128xf32>
    %108 = vector.broadcast %4 : vector<1x128xf32> to vector<8x128xf32>
    %109 = arith.mulf %107, %108 : vector<8x128xf32>
    %110 = arith.mulf %109, %109 : vector<8x128xf32>
    %cst_55 = arith.constant dense<0.000000e+00> : vector<8xf32>
    %111 = vector.multi_reduction <add>, %110, %cst_55 [1] : vector<8x128xf32> to vector<8xf32>
    %112 = vector.shape_cast %111 : vector<8xf32> to vector<8x1xf32>
    %cst_56 = arith.constant 3.125000e-02 : f32
    %113 = vector.broadcast %cst_56 : f32 to vector<8x1xf32>
    %114 = arith.mulf %112, %113 : vector<8x1xf32>
    %cst_57 = arith.constant 9.99999974E-6 : f32
    %115 = vector.broadcast %cst_57 : f32 to vector<8x1xf32>
    %116 = arith.addf %114, %115 : vector<8x1xf32>
    %117 = math.rsqrt %116 : vector<8x1xf32>
    %118 = vector.broadcast %117 : vector<8x1xf32> to vector<8x128xf32>
    %119 = arith.mulf %107, %118 : vector<8x128xf32>
    %c2_58 = arith.constant 2 : index
    %c0_59 = arith.constant 0 : index
    %c0_60 = arith.constant 0 : index
    %120 = vector.load %arg4[%c2_58, %c0_59, %c0_60] : memref<3x1x128xf32, #tpu.memory_space<vmem>>, vector<1x1x128xf32>
    %121 = vector.shape_cast %120 : vector<1x1x128xf32> to vector<1x128xf32>
    %122 = vector.broadcast %121 : vector<1x128xf32> to vector<8x128xf32>
    %123 = arith.mulf %119, %122 : vector<8x128xf32>
    %c2_61 = arith.constant 2 : index
    %c0_62 = arith.constant 0 : index
    %c0_63 = arith.constant 0 : index
    %124 = vector.load %arg5[%c2_61, %c0_62, %c0_63] : memref<3x1x128xf32, #tpu.memory_space<vmem>>, vector<1x1x128xf32>
    %125 = vector.shape_cast %124 : vector<1x1x128xf32> to vector<1x128xf32>
    %126 = vector.broadcast %125 : vector<1x128xf32> to vector<8x128xf32>
    %127 = arith.addf %123, %126 : vector<8x128xf32>
    %128 = vector.extract_strided_slice %95 {offsets = [0, 128], sizes = [8, 128], strides = [1, 1]} : vector<8x256xf32> to vector<8x128xf32>
    %c0_64 = arith.constant 0 : index
    %c0_65 = arith.constant 0 : index
    %129 = vector.load %arg6[%c0_64, %c0_65] : memref<128x128xf32, #tpu.memory_space<vmem>>, vector<128x128xf32>
    %cst_66 = arith.constant dense<0.000000e+00> : vector<8x128xf32>
    %130 = tpu.matmul %127, %129, %cst_66 {dimension_numbers = #tpu.dot_dimension_numbers<[1], [0], [0], [1], [0, 0, 1, 1], [], []>} : vector<8x128xf32>, vector<128x128xf32>, vector<8x128xf32> -> vector<8x128xf32>
    %131 = arith.addf %128, %130 : vector<8x128xf32>
    %c0_67 = arith.constant 0 : index
    %c0_68 = arith.constant 0 : index
    %132 = vector.load %arg7[%c0_67, %c0_68] : memref<1x128xf32, #tpu.memory_space<vmem>>, vector<1x128xf32>
    %133 = vector.broadcast %132 : vector<1x128xf32> to vector<8x128xf32>
    %134 = arith.addf %131, %133 : vector<8x128xf32>
    %135 = arith.negf %134 : vector<8x128xf32>
    %136 = math.exp %135 : vector<8x128xf32>
    %cst_69 = arith.constant 1.000000e+00 : f32
    %137 = vector.broadcast %cst_69 : f32 to vector<8x128xf32>
    %138 = arith.addf %137, %136 : vector<8x128xf32>
    %139 = arith.divf %137, %138 : vector<8x128xf32>
    %140 = arith.subf %127, %92 : vector<8x128xf32>
    %141 = arith.mulf %139, %140 : vector<8x128xf32>
    %142 = arith.addf %92, %141 : vector<8x128xf32>
    %143 = math.tanh %142 : vector<8x128xf32>
    %144 = vector.broadcast %7 : f32 to vector<8x128xf32>
    %145 = arith.mulf %144, %5 : vector<8x128xf32>
    %146 = arith.addf %143, %145 : vector<8x128xf32>
    %c0_70 = arith.constant 0 : index
    %c0_71 = arith.constant 0 : index
    %147 = vector.load %arg9[%c0_70, %c0_71] : memref<8x128xf32, #tpu.memory_space<vmem>>, vector<8x128xf32>
    tpu.vector_store %arg9[%c0_70, %c0_71], %146 {strides = array<i32>} : memref<8x128xf32, #tpu.memory_space<vmem>>, vector<8x128xf32>,
    return
  }
}

</mosaic_0001>

<bundles_post_ra>
// kernel: _rhs_padded.1
= control target key start
LH: loop header
LB: loop body
LE: loop exit
PB: predicated region body
PF: predicated region fallthrough
CT: control target
= control target key end

     0   :  { %15 = vsyncpa [#allocation4], 0  ;;  %s944_s0 = inlined_call_operand.hbm [shape: f32[8,8], index: 0, kind: input, shape index: {}]   ;;  %s945_s1 = inlined_call_operand.hbm [shape: f32[8,128], index: 1, kind: input, shape index: {}]   ;;  %s946_s2 = inlined_call_operand.hbm [shape: f32[3,128,256], index: 2, kind: input, shape index: {}]   ;;  %s947_s3 = inlined_call_operand.vmem [shape: f32[3,1,128], index: 3, kind: input, shape index: {}]   ;;  %s948_s4 = inlined_call_operand.hbm [shape: f32[3,1,128], index: 4, kind: input, shape index: {}]   ;;  %s949_s5 = inlined_call_operand.vmem [shape: f32[3,1,128], index: 5, kind: input, shape index: {}]   ;;  %s950_s6 = inlined_call_operand.hbm [shape: f32[128,128], index: 6, kind: input, shape index: {}]   ;;  %s951_s7 = inlined_call_operand.vmem [shape: f32[1,128], index: 7, kind: input, shape index: {}]   ;;  %s952_s8 = inlined_call_operand.<no memory space> [shape: f32[1], index: 8, kind: input, shape index: {}]   ;;  %s953_s9 = inlined_call_operand.hbm [shape: f32[8,128], index: 9, kind: output, shape index: {}]  }
   0x1   :  { %16 = vsyncpa [#allocation7], 0 }
   0x2   :  { %17 = vsyncpa [#allocation10], 0  ;;  %s35_s11 = sshll.u32 %s945_s1, 4  ;;  %s36_s11 = int_to_ptr.hbm [resolvable:$true] %s35_s11 }
   0x3   :  { %18 = vsyncpa [#allocation5], 0  ;;  %s805_s12 = smov [#allocation6]   ;;  %s60_s16 = sshll.u32 %s948_s4, 4  ;;  %s61_s16 = int_to_ptr.hbm [resolvable:$true] %s60_s16 }
   0x4   :  { %s37_s13 = sshll.u32 %s805_s12, 4  ;;  %s806_s17 = smov [#allocation9]   ;;  %s38_s13 = int_to_ptr.vmem [resolvable:$true] %s37_s13 }
   0x5   :  { %40 = dma.hbm_to_vmem [thread:$0]  %s36_s11, 128, %s38_s13, [#allocation7]  }
   0x6   :  { %s62_s18 = sshll.u32 %s806_s17, 4  ;;  %s807_s19 = smov 16   ;;  %s63_s18 = int_to_ptr.vmem [resolvable:$true] %s62_s18 }
   0x7   :  { %s808_s20 = smov 1   ;;  %s24_s1 = sshll.u32 %s944_s0, 4  ;;  %s25_s1 = int_to_ptr.hbm [resolvable:$true] %s24_s1 }
   0x8   :  { %68 = dma.hbm_to_vmem [thread:$0]  %s61_s16, 48, %s63_s18, [#allocation10], %s807_s19, %s807_s19, %s808_s20  }
   0x9   :  { %s809_s23 = smov [#allocation3]   ;;  %s45_s27 = sshll.u32 %s946_s2, 4  ;;  %s46_s27 = int_to_ptr.hbm [resolvable:$true] %s45_s27 }
   0xa   :  { %s26_s24 = sshll.u32 %s809_s23, 4  ;;  %s810_s4 = smov [#allocation8]   ;;  %s27_s24 = int_to_ptr.vmem [resolvable:$true] %s26_s24 }
   0xb   :  { %29 = dma.hbm_to_vmem [thread:$0]  %s25_s1, 128, %s27_s24, [#allocation4]  }
   0xc   :  { %s47_s28 = sshll.u32 %s810_s4, 4  ;;  %s75_s10 = sshll.u32 %s950_s6, 4  ;;  %s48_s28 = int_to_ptr.vmem [resolvable:$true] %s47_s28  ;;  %s76_s10 = int_to_ptr.hbm [resolvable:$true] %s75_s10 }
   0xd   :  { %s811_s11 = smov 256   ;;  %s812_s0 = smov [#allocation11]  }
   0xe   :  { %53 = dma.hbm_to_vmem [thread:$0]  %s46_s27, 12288, %s48_s28, [#allocation7], %s811_s11, %s811_s11, %s807_s19  }
   0xf   :  { %s77_s12 = sshll.u32 %s812_s0, 4  ;;  %s813_s13 = smov 128   ;;  %s78_s12 = int_to_ptr.vmem [resolvable:$true] %s77_s12 }
  0x10   :  { %s814_s14 = smov 8  }
  0x11   :  { %83 = dma.hbm_to_vmem [thread:$0]  %s76_s10, 2048, %s78_s12, [#allocation10], %s813_s13, %s813_s13, %s814_s14  }
  0x12   :  { %797 = dma.done.wait [#allocation4], 128  }
  0x13   :  { %798 = vsyncadd [#allocation4], 4294967168 }
  0x14   :  { %799 = dma.done.wait [#allocation7], 12416  }
  0x15   :  { %800 = vsyncadd [#allocation7], 4294954880 }
  0x16   :  { %801 = dma.done.wait [#allocation10], 2096  }
  0x17   :  { %802 = vsyncadd [#allocation10], 4294965200  ;;  %v131_v0 = vld [vmem:[#allocation8 + $0xf0] sm:$0xff]  ;;  %v130_v1 = vld [vmem:[#allocation8 + $0xe0] sm:$0xff]  ;;  %vm156_vm0 = vcmask 64512   ;;  %v108_v26 = vlaneseq  ;;  %v815_v30 = vmov 0.0  }
  0x18   :  { %132 = vmatpush.msra.mxu0 %v131_v0  ;;  %v129_v2 = vld [vmem:[#allocation8 + $0xd0] sm:$0xff]  ;;  %v128_v3 = vld [vmem:[#allocation8 + $0xc0] sm:$0xff]  ;;  %v882_v16 = vld [vmem:[#allocation6] sm:$0xff]  ;;  %s816_s25 = smov [#allocation12]   ;;  %s593_s28 = sshll.u32 %s953_s9, 4  ;;  %s594_s28 = int_to_ptr.hbm [resolvable:$true] %s593_s28 }
  0x19   :  { %v127_v4 = vld [vmem:[#allocation8 + $0xb0] sm:$0xff]  ;;  %v126_v5 = vld [vmem:[#allocation8 + $0xa0] sm:$0xff]  ;;  %v243_v23 = vld [vmem:[#allocation8 + $0x1f8] sm:$0xff]  ;;  %v109_v27 = vand.u32 127, %v108_v26  ;;  %s591_s26 = sshll.u32 %s816_s25, 4  ;;  %s592_s26 = int_to_ptr.vmem [resolvable:$true] %s591_s26 }
  0x1a   :  { %133 = vmatpush.msra.mxu0 %v130_v1  ;;  %v125_v6 = vld [vmem:[#allocation8 + $0x90] sm:$0xff]  ;;  %v124_v7 = vld [vmem:[#allocation8 + $0x80] sm:$0xff]  ;;  %264 = vmatpush.msra.mxu3 %v243_v23  ;;  %v241_v25 = vld [vmem:[#allocation8 + $0x1e8] sm:$0xff] }
  0x1b   :  { %v123_v8 = vld [vmem:[#allocation8 + $0x70] sm:$0xff]  ;;  %v122_v9 = vld [vmem:[#allocation8 + $0x60] sm:$0xff]  ;;  %vm110_vm1 = vcmp.lt.s32.totalorder %v109_v27, 32  ;;  %v239_v36 = vld [vmem:[#allocation8 + $0x1d8] sm:$0xff] }
  0x1c   :  { %134 = vmatpush.msra.mxu0 %v129_v2  ;;  %v121_v10 = vld [vmem:[#allocation8 + $0x50] sm:$0xff]  ;;  %v120_v11 = vld [vmem:[#allocation8 + $0x40] sm:$0xff]  ;;  %265 = vmatpush.msra.mxu3 %v241_v25  ;;  %v892_v31 = vsel %vm110_vm1, 1.0, %v815_v30  ;;  %v237_v38 = vld [vmem:[#allocation8 + $0x1c8] sm:$0xff] }
  0x1d   :  { %v119_v12 = vld [vmem:[#allocation8 + $0x30] sm:$0xff]  ;;  %v118_v13 = vld [vmem:[#allocation8 + $0x20] sm:$0xff]  ;;  %v235_v40 = vld [vmem:[#allocation8 + $0x1b8] sm:$0xff] }
  0x1e   :  { %135 = vmatpush.msra.mxu0 %v128_v3  ;;  %v117_v14 = vld [vmem:[#allocation8 + $0x10] sm:$0xff]  ;;  %v116_v15 = vld [vmem:[#allocation8] sm:$0xff]  ;;  %266 = vmatpush.msra.mxu3 %v239_v36  ;;  %v233_v42 = vld [vmem:[#allocation8 + $0x1a8] sm:$0xff] }
  0x1f   :  { %v885_v17 = vld [vmem:[#allocation3] sm:$0xff]  ;;  %v240_v24 = vld [vmem:[#allocation8 + $0x1e0] sm:$0xff]  ;;  %v231_v44 = vld [vmem:[#allocation8 + $0x198] sm:$0xff] }
  0x20   :  { %136 = vmatpush.msra.mxu0 %v127_v4  ;;  %v627_v19 = vld [vmem:[%s947_s3] ss:$0 sm:$0xff]  ;;  %v236_v37 = vld [vmem:[#allocation8 + $0x1c0] sm:$0xff]  ;;  %267 = vmatpush.msra.mxu3 %v237_v38  ;;  %v229_v46 = vld [vmem:[#allocation8 + $0x188] sm:$0xff] }
  0x21   :  { %v242_v22 = vld [vmem:[#allocation8 + $0x1f0] sm:$0xff]  ;;  %v232_v41 = vld [vmem:[#allocation8 + $0x1a0] sm:$0xff]  ;;  %v227_v48 = vld [vmem:[#allocation8 + $0x178] sm:$0xff] }
  0x22   :  { %137 = vmatpush.msra.mxu0 %v126_v5  ;;  %244 = vmatpush.msra.mxu2 %v242_v22  ;;  %v238_v35 = vld [vmem:[#allocation8 + $0x1d0] sm:$0xff]  ;;  %v228_v45 = vld [vmem:[#allocation8 + $0x180] sm:$0xff]  ;;  %v225_v50 = vld [vmem:[#allocation8 + $0x168] sm:$0xff] }
  0x23   :  { %v234_v39 = vld [vmem:[#allocation8 + $0x1b0] sm:$0xff]  ;;  %268 = vmatpush.msra.mxu3 %v235_v40  ;;  %v224_v49 = vld [vmem:[#allocation8 + $0x160] sm:$0xff]  ;;  %v223_v52 = vld [vmem:[#allocation8 + $0x158] sm:$0xff] }
  0x24   :  { %138 = vmatpush.msra.mxu0 %v125_v6  ;;  %245 = vmatpush.msra.mxu2 %v240_v24  ;;  %v230_v43 = vld [vmem:[#allocation8 + $0x190] sm:$0xff]  ;;  %v220_v53 = vld [vmem:[#allocation8 + $0x140] sm:$0xff]  ;;  %v221_v54 = vld [vmem:[#allocation8 + $0x148] sm:$0xff] }
  0x25   :  { %269 = vmatpush.msra.mxu3 %v233_v42  ;;  %v226_v47 = vld [vmem:[#allocation8 + $0x170] sm:$0xff]  ;;  %v219_v56 = vld [vmem:[#allocation8 + $0x138] sm:$0xff]  ;;  %v216_v57 = vld [vmem:[#allocation8 + $0x120] sm:$0xff] }
  0x26   :  { %139 = vmatpush.msra.mxu0 %v124_v7  ;;  %246 = vmatpush.msra.mxu2 %v238_v35  ;;  %v222_v51 = vld [vmem:[#allocation8 + $0x150] sm:$0xff]  ;;  %v217_v58 = vld [vmem:[#allocation8 + $0x128] sm:$0xff]  ;;  %v215_v60 = vld [vmem:[#allocation8 + $0x118] sm:$0xff] }
  0x27   :  { %270 = vmatpush.msra.mxu3 %v231_v44  ;;  %v218_v55 = vld [vmem:[#allocation8 + $0x130] sm:$0xff]  ;;  %v212_v61 = vld [vmem:[#allocation8 + $0x100] sm:$0xff]  ;;  %v213_v62 = vld [vmem:[#allocation8 + $0x108] sm:$0xff] }
  0x28   :  { %140 = vmatpush.msra.mxu0 %v123_v8  ;;  %247 = vmatpush.msra.mxu2 %v236_v37  ;;  %v214_v59 = vld [vmem:[#allocation8 + $0x110] sm:$0xff]  ;;  %v628_v8 = vld [vmem:[#allocation9] ss:$0 sm:$0xff]  ;;  %v346_v37 = vld [vmem:[#allocation11 + $0x20] sm:$0xff] }
  0x29   :  { %271 = vmatpush.msra.mxu3 %v229_v46  ;;  %v355_v27 = vld [vmem:[#allocation11 + $0x68] sm:$0xff]  ;;  %v352_v30 = vld [vmem:[#allocation11 + $0x50] sm:$0xff]  ;;  %v345_v38 = vld [vmem:[#allocation11 + $0x18] sm:$0xff] }
  0x2a   :  { %141 = vmatpush.msra.mxu0 %v122_v9  ;;  %248 = vmatpush.msra.mxu2 %v234_v39  ;;  %v348_v35 = vld [vmem:[#allocation11 + $0x30] sm:$0xff]  ;;  %v347_v36 = vld [vmem:[#allocation11 + $0x28] sm:$0xff] }
  0x2b   :  { %272 = vmatpush.msra.mxu3 %v227_v48  ;;  %v344_v39 = vld [vmem:[#allocation11 + $0x10] sm:$0xff]  ;;  %v343_v40 = vld [vmem:[#allocation11 + $0x8] sm:$0xff] }
  0x2c   :  { %142 = vmatpush.msra.mxu0 %v121_v10  ;;  %249 = vmatpush.msra.mxu2 %v232_v41  ;;  %v342_v41 = vld [vmem:[#allocation11] sm:$0xff] }
  0x2d   :  { %273 = vmatpush.msra.mxu3 %v225_v50 }
  0x2e   :  { %143 = vmatpush.msra.mxu0 %v120_v11  ;;  %250 = vmatpush.msra.mxu2 %v230_v43  ;;  %v629_v11 = vld [vmem:[%s949_s5] ss:$0 sm:$0xff] }
  0x2f   :  { %274 = vmatpush.msra.mxu3 %v223_v52 }
  0x30   :  { %144 = vmatpush.msra.mxu0 %v119_v12  ;;  %251 = vmatpush.msra.mxu2 %v228_v45 }
  0x31   :  { %275 = vmatpush.msra.mxu3 %v221_v54  ;;  %v632_v54 = vld [vmem:[%s949_s5 + $0x1] ss:$0 sm:$0xff] }
  0x32   :  { %145 = vmatpush.msra.mxu0 %v118_v13  ;;  %252 = vmatpush.msra.mxu2 %v226_v47 }
  0x33   :  { %276 = vmatpush.msra.mxu3 %v219_v56 }
  0x34   :  { %146 = vmatpush.msra.mxu0 %v117_v14  ;;  %253 = vmatpush.msra.mxu2 %v224_v49 }
  0x35   :  { %277 = vmatpush.msra.mxu3 %v217_v58  ;;  %v438_v58 = vld [vmem:[#allocation8 + $0x2f8] sm:$0xff] }
  0x36   :  { %147 = vmatpush.msra.mxu0 %v116_v15  ;;  %254 = vmatpush.msra.mxu2 %v222_v51  ;;  %v630_v15 = vld [vmem:[%s947_s3 + $0x1] ss:$0 sm:$0xff]  ;;  %v631_v51 = vld [vmem:[#allocation9 + $0x1] ss:$0 sm:$0xff] }
  0x37   :  { %148 = vmatmul.f32.vlgmr.msra.gmra.mxu0 %v882_v16  ;;  %278 = vmatpush.msra.mxu3 %v215_v60  ;;  %v436_v60 = vld [vmem:[#allocation8 + $0x2e8] sm:$0xff] }
  0x38   :  { %255 = vmatpush.msra.mxu2 %v220_v53 }
  0x39   :  { %279 = vmatpush.msra.mxu3 %v213_v62  ;;  %v434_v62 = vld [vmem:[#allocation8 + $0x2d8] sm:$0xff] }
  0x3a   :  { %256 = vmatpush.msra.mxu2 %v218_v55 }
  0x3c   :  { %257 = vmatpush.msra.mxu2 %v216_v57  ;;  %v437_v57 = vld [vmem:[#allocation8 + $0x2f0] sm:$0xff] }
  0x3d   :  { %439 = vmatpush.msrb.mxu0 %v437_v57 }
  0x3e   :  { %258 = vmatpush.msra.mxu2 %v214_v59  ;;  %v435_v59 = vld [vmem:[#allocation8 + $0x2e0] sm:$0xff] }
  0x3f   :  { %440 = vmatpush.msrb.mxu0 %v435_v59 }
  0x40   :  { %259 = vmatpush.msra.mxu2 %v212_v61  ;;  %v433_v61 = vld [vmem:[#allocation8 + $0x2d0] sm:$0xff] }
  0x41   :  { %441 = vmatpush.msrb.mxu0 %v433_v61 }
  0x42   :  { %459 = vmatpush.msrb.mxu2 %v438_v58 }
  0x44   :  { %460 = vmatpush.msrb.mxu2 %v436_v60 }
  0x46   :  { %461 = vmatpush.msrb.mxu2 %v434_v62 }
  0xb4   :  { %v149_v18 = vpop.f32.mrf.mxu0 }
  0xb5   :  { %175 = vmatpush.msra.mxu1 %v149_v18 }
  0xb6   :  { %606 = vmatmul.msk.f32.vlgmr.msra.gmra.mxu1 %vm156_vm0, %v885_v17 }
 0x133   :  { %v177_v20 = vpop.f32.mrf.mxu1 }
 0x134   :  { %v178_v21 = vadd.f32 %v627_v19, %v177_v20  ;;  %v357_v20 = vld [vmem:[#allocation11 + $0x78] sm:$0xff] }
 0x135   :  { %537 = vmatpush.msrb.mxu3 %v357_v20 }
 0x136   :  { %180 = vadd.xlane.f32.xlu0 %v178_v21 }
 0x1a9   :  { %v181_v28 = vpop.xlane.xlu0 %180 }
 0x1aa   :  { %v182_v29 = vmul.f32 0.03125, %v181_v28  ;;  %v354_v28 = vld [vmem:[#allocation11 + $0x60] sm:$0xff] }
 0x1ac   :  { %v894_v32 = vsub.f32 %v178_v21, %v182_v29  ;;  %v356_v21 = vld [vmem:[#allocation11 + $0x70] sm:$0xff]  ;;  %v353_v29 = vld [vmem:[#allocation11 + $0x58] sm:$0xff] }
 0x1ad   :  { %538 = vmatpush.msrb.mxu3 %v356_v21 }
 0x1ae   :  { %v184_v33 = vmul.f32 %v892_v31, %v894_v32 }
 0x1af   :  { %539 = vmatpush.msrb.mxu3 %v355_v27 }
 0x1b0   :  { %v185_v34 = vmul.f32 %v184_v33, %v184_v33  ;;  %v350_v33 = vld [vmem:[#allocation11 + $0x40] sm:$0xff] }
 0x1b1   :  { %540 = vmatpush.msrb.mxu3 %v354_v28 }
 0x1b2   :  { %186 = vadd.xlane.f32.xlu0 %v185_v34  ;;  %v349_v34 = vld [vmem:[#allocation11 + $0x38] sm:$0xff] }
 0x1b3   :  { %541 = vmatpush.msrb.mxu3 %v353_v29 }
 0x1b5   :  { %542 = vmatpush.msrb.mxu3 %v352_v30 }
 0x225   :  { %v187_v63 = vpop.xlane.xlu0 %186 }
 0x226   :  { %v188_v0 = vmul.f32 0.03125, %v187_v63  ;;  %v431_v63 = vld [vmem:[#allocation8 + $0x2c0] sm:$0xff] }
 0x227   :  { %442 = vmatpush.msrb.mxu0 %v431_v63 }
 0x228   :  { %v189_v1 = vadd.f32 1e-05, %v188_v0  ;;  %v432_v0 = vld [vmem:[#allocation8 + $0x2c8] sm:$0xff] }
 0x229   :  { %462 = vmatpush.msrb.mxu2 %v432_v0 }
 0x22a   :  { %637 = vrsqrt.f32 %v189_v1  ;;  %vm196_vm3 = vweird.f32 %v189_v1 }
 0x230   :  { %v638_v2 = vpop.eup %637 }
 0x231   :  { %v191_v3 = vmul.f32 %v638_v2, %v189_v1  ;;  %vm197_vm2 = vweird.f32 %v638_v2  ;;  %v429_v1 = vld [vmem:[#allocation8 + $0x2b0] sm:$0xff] }
 0x232   :  { %vm198_vm4 = vmor %vm196_vm3, %vm197_vm2  ;;  %443 = vmatpush.msrb.mxu0 %v429_v1 }
 0x233   :  { %v192_v4 = vmul.f32 %v638_v2, %v191_v3  ;;  %v427_v3 = vld [vmem:[#allocation8 + $0x2a0] sm:$0xff] }
 0x234   :  { %444 = vmatpush.msrb.mxu0 %v427_v3 }
 0x235   :  { %v193_v5 = vmul.f32 0.5, %v192_v4  ;;  %v428_v4 = vld [vmem:[#allocation8 + $0x2a8] sm:$0xff] }
 0x237   :  { %v194_v6 = vsub.f32 1.5, %v193_v5  ;;  %v425_v5 = vld [vmem:[#allocation8 + $0x290] sm:$0xff] }
 0x238   :  { %445 = vmatpush.msrb.mxu0 %v425_v5 }
 0x239   :  { %v195_v7 = vmul.f32 %v638_v2, %v194_v6  ;;  %v426_v6 = vld [vmem:[#allocation8 + $0x298] sm:$0xff] }
 0x23b   :  { %v199_v9 = vsel %vm198_vm4, %v638_v2, %v195_v7  ;;  %v430_v2 = vld [vmem:[#allocation8 + $0x2b8] sm:$0xff]  ;;  %v423_v7 = vld [vmem:[#allocation8 + $0x280] sm:$0xff] }
 0x23c   :  { %v200_v10 = vmul.f32 %v199_v9, %v894_v32  ;;  %v351_v32 = vld [vmem:[#allocation11 + $0x48] sm:$0xff]  ;;  %463 = vmatpush.msrb.mxu2 %v430_v2  ;;  %446 = vmatpush.msrb.mxu0 %v423_v7  ;;  %v635_v2 = vld [vmem:[#allocation9 + $0x2] ss:$0 sm:$0xff] }
 0x23d   :  { %543 = vmatpush.msrb.mxu3 %v351_v32  ;;  %v421_v9 = vld [vmem:[#allocation8 + $0x270] sm:$0xff] }
 0x23e   :  { %v205_v12 = vmul.f32 %v628_v8, %v200_v10  ;;  %464 = vmatpush.msrb.mxu2 %v428_v4  ;;  %v424_v8 = vld [vmem:[#allocation8 + $0x288] sm:$0xff]  ;;  %v422_v10 = vld [vmem:[#allocation8 + $0x278] sm:$0xff]  ;;  %447 = vmatpush.msrb.mxu0 %v421_v9 }
 0x23f   :  { %544 = vmatpush.msrb.mxu3 %v350_v33 }
 0x240   :  { %v902_v13 = vadd.f32 %v629_v11, %v205_v12  ;;  %465 = vmatpush.msrb.mxu2 %v426_v6  ;;  %v419_v11 = vld [vmem:[#allocation8 + $0x260] sm:$0xff]  ;;  %v420_v12 = vld [vmem:[#allocation8 + $0x268] sm:$0xff] }
 0x241   :  { %545 = vmatpush.msrb.mxu3 %v349_v34  ;;  %448 = vmatpush.msrb.mxu0 %v419_v11 }
 0x242   :  { %260 = vmatmul.f32.vlgmr.msra.gmra.mxu2 %v902_v13  ;;  %280 = vmatmul.f32.vlgmr.msra.gmra.mxu3 %v902_v13 }
 0x243   :  { %546 = vmatpush.msrb.mxu3 %v348_v35  ;;  %466 = vmatpush.msrb.mxu2 %v424_v8 }
 0x245   :  { %547 = vmatpush.msrb.mxu3 %v347_v36  ;;  %467 = vmatpush.msrb.mxu2 %v422_v10 }
 0x247   :  { %548 = vmatpush.msrb.mxu3 %v346_v37  ;;  %468 = vmatpush.msrb.mxu2 %v420_v12 }
 0x249   :  { %549 = vmatpush.msrb.mxu3 %v345_v38 }
 0x24b   :  { %550 = vmatpush.msrb.mxu3 %v344_v39 }
 0x24d   :  { %551 = vmatpush.msrb.mxu3 %v343_v40 }
 0x24f   :  { %552 = vmatpush.msrb.mxu3 %v342_v41 }
 0x2c5   :  { %v261_v14 = vpop.f32.mrf.mxu2 }
 0x2c6   :  { %304 = vmatpush.msrb.mxu1 %v261_v14  ;;  %v417_v14 = vld [vmem:[#allocation8 + $0x250] sm:$0xff] }
 0x2c7   :  { %608 = vmatmul.msk.f32.vlgmr.msrb.gmra.mxu1 %vm156_vm0, %v885_v17  ;;  %449 = vmatpush.msrb.mxu0 %v417_v14 }
 0x2c8   :  { %358 = vmatpush.msra.mxu1 %v357_v20  ;;  %v413_v20 = vld [vmem:[#allocation8 + $0x230] sm:$0xff] }
 0x2ca   :  { %359 = vmatpush.msra.mxu1 %v356_v21  ;;  %v414_v21 = vld [vmem:[#allocation8 + $0x238] sm:$0xff] }
 0x2cc   :  { %360 = vmatpush.msra.mxu1 %v355_v27  ;;  %v281_v27 = vpop.f32.mrf.mxu3 }
 0x2ce   :  { %361 = vmatpush.msra.mxu1 %v354_v28 }
 0x2d0   :  { %362 = vmatpush.msra.mxu1 %v353_v29 }
 0x2d2   :  { %363 = vmatpush.msra.mxu1 %v352_v30  ;;  %v407_v30 = vld [vmem:[#allocation8 + $0x200] sm:$0xff] }
 0x2d4   :  { %364 = vmatpush.msra.mxu1 %v351_v32  ;;  %v408_v32 = vld [vmem:[#allocation8 + $0x208] sm:$0xff] }
 0x2d6   :  { %365 = vmatpush.msra.mxu1 %v350_v33 }
 0x2d8   :  { %366 = vmatpush.msra.mxu1 %v349_v34 }
 0x2da   :  { %367 = vmatpush.msra.mxu1 %v348_v35 }
 0x2dc   :  { %368 = vmatpush.msra.mxu1 %v347_v36 }
 0x2de   :  { %369 = vmatpush.msra.mxu1 %v346_v37 }
 0x2e0   :  { %370 = vmatpush.msra.mxu1 %v345_v38 }
 0x2e2   :  { %371 = vmatpush.msra.mxu1 %v344_v39 }
 0x2e4   :  { %372 = vmatpush.msra.mxu1 %v343_v40 }
 0x2e6   :  { %373 = vmatpush.msra.mxu1 %v342_v41 }
 0x344   :  { %v306_v18 = vpop.f32.mrf.mxu1 }
 0x345   :  { %v307_v19 = vadd.f32 %v630_v15, %v306_v18  ;;  %v418_v15 = vld [vmem:[#allocation8 + $0x258] sm:$0xff]  ;;  %v415_v18 = vld [vmem:[#allocation8 + $0x240] sm:$0xff] }
 0x346   :  { %469 = vmatpush.msrb.mxu2 %v418_v15  ;;  %450 = vmatpush.msrb.mxu0 %v415_v18 }
 0x347   :  { %309 = vadd.xlane.f32.xlu1 %v307_v19 }
 0x348   :  { %451 = vmatpush.msrb.mxu0 %v413_v20 }
 0x3ba   :  { %v310_v22 = vpop.xlane.xlu1 %309 }
 0x3bb   :  { %v311_v23 = vmul.f32 0.03125, %v310_v22  ;;  %v411_v22 = vld [vmem:[#allocation8 + $0x220] sm:$0xff] }
 0x3bc   :  { %452 = vmatpush.msrb.mxu0 %v411_v22 }
 0x3bd   :  { %v312_v24 = vsub.f32 %v307_v19, %v311_v23  ;;  %v416_v19 = vld [vmem:[#allocation8 + $0x248] sm:$0xff] }
 0x3be   :  { %470 = vmatpush.msrb.mxu2 %v416_v19  ;;  %v412_v23 = vld [vmem:[#allocation8 + $0x228] sm:$0xff] }
 0x3bf   :  { %v313_v25 = vmul.f32 %v892_v31, %v312_v24 }
 0x3c0   :  { %471 = vmatpush.msrb.mxu2 %v414_v21 }
 0x3c1   :  { %v314_v26 = vmul.f32 %v313_v25, %v313_v25  ;;  %v409_v25 = vld [vmem:[#allocation8 + $0x210] sm:$0xff] }
 0x3c2   :  { %472 = vmatpush.msrb.mxu2 %v412_v23  ;;  %453 = vmatpush.msrb.mxu0 %v409_v25 }
 0x3c3   :  { %315 = vadd.xlane.f32.xlu1 %v314_v26  ;;  %v410_v26 = vld [vmem:[#allocation8 + $0x218] sm:$0xff] }
 0x3c4   :  { %473 = vmatpush.msrb.mxu2 %v410_v26  ;;  %454 = vmatpush.msrb.mxu0 %v407_v30  ;;  %v582_v30 = vstv %s952_s8 }
 0x3c6   :  { %474 = vmatpush.msrb.mxu2 %v408_v32  ;;  %v583_v32 = vmul.f32 %v582_v30, %v882_v16 }
 0x436   :  { %v316_v42 = vpop.xlane.xlu1 %315 }
 0x437   :  { %v317_v43 = vmul.f32 0.03125, %v316_v42 }
 0x439   :  { %v318_v44 = vadd.f32 1e-05, %v317_v43 }
 0x43b   :  { %639 = vrsqrt.f32 %v318_v44  ;;  %vm325_vm6 = vweird.f32 %v318_v44 }
 0x441   :  { %v640_v45 = vpop.eup %639 }
 0x442   :  { %v320_v46 = vmul.f32 %v640_v45, %v318_v44  ;;  %vm326_vm5 = vweird.f32 %v640_v45 }
 0x443   :  { %vm327_vm7 = vmor %vm325_vm6, %vm326_vm5 }
 0x444   :  { %v321_v47 = vmul.f32 %v640_v45, %v320_v46 }
 0x446   :  { %v322_v48 = vmul.f32 0.5, %v321_v47 }
 0x448   :  { %v323_v49 = vsub.f32 1.5, %v322_v48 }
 0x44a   :  { %v324_v50 = vmul.f32 %v640_v45, %v323_v49 }
 0x44c   :  { %v328_v52 = vsel %vm327_vm7, %v640_v45, %v324_v50 }
 0x44d   :  { %v329_v53 = vmul.f32 %v328_v52, %v312_v24  ;;  %v921_v24 = vld [vmem:[%s951_s7] ss:$0 sm:$0xff] }
 0x44f   :  { %v335_v55 = vmul.f32 %v631_v51, %v329_v53  ;;  %v634_v51 = vld [vmem:[%s947_s3 + $0x2] ss:$0 sm:$0xff] }
 0x451   :  { %v915_v56 = vadd.f32 %v632_v54, %v335_v55 }
 0x453   :  { %374 = vmatmul.f32.vlgmr.msra.gmra.mxu1 %v915_v56  ;;  %v403_v45 = vsub.f32 %v915_v56, %v902_v13 }
 0x4d0   :  { %v375_v28 = vpop.f32.mrf.mxu1 }
 0x4d1   :  { %v378_v29 = vadd.f32 %v375_v28, %v281_v27 }
 0x4d3   :  { %v383_v33 = vadd.f32 %v921_v24, %v378_v29 }
 0x4d5   :  { %v610_v34 = vmul.f32 -1.442695, %v383_v33 }
 0x4d7   :  { %641 = vpow2.f32 %v610_v34 }
 0x4dd   :  { %v642_v35 = vpop.eup %641 }
 0x4de   :  { %v387_v36 = vadd.f32 1.0, %v642_v35 }
 0x4e0   :  { %643 = vrcp.f32 %v387_v36  ;;  %v399_v40 = vand.u32 2147483648, %v387_v36  ;;  %v397_v42 = vand.u32 2147483647, %v387_v36  ;;  %vm393_vm9 = vweird.f32 %v387_v36 }
 0x4e2   :  { %v400_v44 = vor.u32 1.1754944e-38, %v399_v40  ;;  %vm398_vm11 = vcmp.eq.f32.partialorder %v397_v42, 8.507059e+37 }
 0x4e6   :  { %v644_v37 = vpop.eup %643 }
 0x4e7   :  { %v389_v38 = vmul.f32 %v644_v37, %v387_v36  ;;  %vm394_vm8 = vweird.f32 %v644_v37 }
 0x4e8   :  { %vm395_vm10 = vmor %vm393_vm9, %vm394_vm8 }
 0x4e9   :  { %v390_v39 = vsub.f32 1.0, %v389_v38 }
 0x4eb   :  { %v391_v41 = vmul.f32 %v644_v37, %v390_v39 }
 0x4ed   :  { %v392_v43 = vadd.f32 %v644_v37, %v391_v41 }
 0x4ef   :  { %v396_v46 = vsel %vm395_vm10, %v644_v37, %v392_v43 }
 0x4f0   :  { %v401_v47 = vsel %vm398_vm11, %v400_v44, %v396_v46 }
 0x4f1   :  { %v404_v48 = vmul.f32 %v403_v45, %v401_v47 }
 0x4f3   :  { %v405_v49 = vadd.f32 %v404_v48, %v902_v13 }
 0x4f5   :  { %455 = vmatmul.f32.vlgmr.msrb.gmra.mxu0 %v405_v49  ;;  %475 = vmatmul.f32.vlgmr.msrb.gmra.mxu2 %v405_v49 }
 0x572   :  { %v456_v50 = vpop.f32.mrf.mxu0 }
 0x573   :  { %499 = vmatpush.msrb.mxu1 %v456_v50 }
 0x574   :  { %612 = vmatmul.msk.f32.vlgmr.msrb.gmra.mxu1 %vm156_vm0, %v885_v17 }
 0x578   :  { %v476_v7 = vpop.f32.mrf.mxu2 }
 0x5f1   :  { %v501_v52 = vpop.f32.mrf.mxu1 }
 0x5f2   :  { %v502_v53 = vadd.f32 %v634_v51, %v501_v52 }
 0x5f4   :  { %504 = vadd.xlane.f32.xlu2 %v502_v53 }
 0x667   :  { %v505_v54 = vpop.xlane.xlu2 %504 }
 0x668   :  { %v506_v55 = vmul.f32 0.03125, %v505_v54 }
 0x66a   :  { %v507_v56 = vsub.f32 %v502_v53, %v506_v55 }
 0x66c   :  { %v508_v57 = vmul.f32 %v892_v31, %v507_v56  ;;  %v636_v31 = vld [vmem:[%s949_s5 + $0x2] ss:$0 sm:$0xff] }
 0x66e   :  { %v509_v13 = vmul.f32 %v508_v57, %v508_v57 }
 0x670   :  { %510 = vadd.xlane.f32.xlu2 %v509_v13 }
 0x6e3   :  { %v511_v58 = vpop.xlane.xlu2 %510 }
 0x6e4   :  { %v512_v59 = vmul.f32 0.03125, %v511_v58 }
 0x6e6   :  { %v513_v60 = vadd.f32 1e-05, %v512_v59 }
 0x6e8   :  { %645 = vrsqrt.f32 %v513_v60  ;;  %vm520_vm13 = vweird.f32 %v513_v60 }
 0x6ee   :  { %v646_v61 = vpop.eup %645 }
 0x6ef   :  { %v515_v17 = vmul.f32 %v646_v61, %v513_v60  ;;  %vm521_vm12 = vweird.f32 %v646_v61 }
 0x6f0   :  { %vm522_vm14 = vmor %vm520_vm13, %vm521_vm12 }
 0x6f1   :  { %v516_v62 = vmul.f32 %v646_v61, %v515_v17 }
 0x6f3   :  { %v517_v63 = vmul.f32 0.5, %v516_v62 }
 0x6f5   :  { %v518_v0 = vsub.f32 1.5, %v517_v63 }
 0x6f7   :  { %v519_v1 = vmul.f32 %v646_v61, %v518_v0 }
 0x6f9   :  { %v523_v3 = vsel %vm522_vm14, %v646_v61, %v519_v1 }
 0x6fa   :  { %v524_v4 = vmul.f32 %v523_v3, %v507_v56 }
 0x6fc   :  { %v530_v5 = vmul.f32 %v635_v2, %v524_v4 }
 0x6fe   :  { %v536_v6 = vadd.f32 %v636_v31, %v530_v5 }
 0x700   :  { %553 = vmatmul.f32.vlgmr.msrb.gmra.mxu3 %v536_v6  ;;  %v578_v26 = vsub.f32 %v536_v6, %v405_v49 }
 0x783   :  { %v554_v8 = vpop.f32.mrf.mxu3 }
 0x784   :  { %v557_v9 = vadd.f32 %v554_v8, %v476_v7 }
 0x786   :  { %v558_v10 = vadd.f32 %v921_v24, %v557_v9 }
 0x788   :  { %v614_v11 = vmul.f32 -1.442695, %v558_v10 }
 0x78a   :  { %647 = vpow2.f32 %v614_v11 }
 0x790   :  { %v648_v12 = vpop.eup %647 }
 0x791   :  { %v562_v14 = vadd.f32 1.0, %v648_v12 }
 0x793   :  { %649 = vrcp.f32 %v562_v14  ;;  %v574_v20 = vand.u32 2147483648, %v562_v14  ;;  %v572_v22 = vand.u32 2147483647, %v562_v14  ;;  %vm568_vm0 = vweird.f32 %v562_v14 }
 0x795   :  { %v575_v25 = vor.u32 1.1754944e-38, %v574_v20  ;;  %vm573_vm2 = vcmp.eq.f32.partialorder %v572_v22, 8.507059e+37 }
 0x799   :  { %v650_v15 = vpop.eup %649 }
 0x79a   :  { %v564_v18 = vmul.f32 %v650_v15, %v562_v14  ;;  %vm569_vm15 = vweird.f32 %v650_v15 }
 0x79b   :  { %vm570_vm1 = vmor %vm568_vm0, %vm569_vm15 }
 0x79c   :  { %v565_v19 = vsub.f32 1.0, %v564_v18 }
 0x79e   :  { %v566_v21 = vmul.f32 %v650_v15, %v565_v19 }
 0x7a0   :  { %v567_v23 = vadd.f32 %v650_v15, %v566_v21 }
 0x7a2   :  { %v571_v27 = vsel %vm570_vm1, %v650_v15, %v567_v23 }
 0x7a3   :  { %v576_v24 = vsel %vm573_vm2, %v575_v25, %v571_v27 }
 0x7a4   :  { %v579_v28 = vmul.f32 %v578_v26, %v576_v24 }
 0x7a6   :  { %v580_v29 = vadd.f32 %v579_v28, %v405_v49 }
 0x7a8   :  { %651 = vtanh.f32 %v580_v29 }
 0x7ae   :  { %v652_v33 = vpop.eup %651 }
 0x7af   :  { %v584_v34 = vadd.f32 %v652_v33, %v583_v32 }
 0x7b1   :  { %585 = vst [vmem:[#allocation12] sm:$0xff] %v584_v34 }
 0x7b2   :  { %596 = dma.vmem_to_hbm [thread:$0]  %s592_s26, 128, %s594_s28, [#allocation5]  }
 0x7b3   :  { %803 = dma.done.wait [#allocation5], 128  }
 0x7b4   :  { %804 = vsyncadd [#allocation5], 4294967168 }
 0x7b5   :  { %601 = vsyncpa [#allocation4], 1 }
 0x7b6   :  { %602 = vsyncpa [#allocation7], 1 }
 0x7b7   :  { %603 = vsyncpa [#allocation10], 1 }
 0x7b8   :  { %604 = vsyncpa [#allocation5], 1 }

</bundles_post_ra>
